<compile_context>
chip_gen: v7x
topology: tpu7x:2x2x1
jax: 0.10.0
libtpu: 0.0.40
codegen_flags: <defaults>
</compile_context>

<pallas_src>
import functools

import jax
import jax.numpy as jnp
from jax import lax
from jax.experimental import pallas as pl
from jax.experimental.pallas import tpu as pltpu

_LANES = 128
_PAIR = 2 * _LANES            # interleaved output lanes per input lane-row
_MIN_PALLAS_N = 1024          # below this, pallas_call launch overhead dominates
_MAX_BLOCK_ROWS = 1024        # (1024,128) in + (1024,256) out f32 = 1.5 MiB per buffer set
_MAX_BLOCK_LANES = 8 * 1024   # (1, 8192) f32 tile = 32 KiB per buffer


def _make_interleaved_kernel(start: float, delta: float, scale: float):
    """Kernel writing the final interleaved weight tile.

    For an epoch tile e of shape (R, 128) the output tile is (R, 256) with
      out[:, 2c]   = 1.0                                     (data weight)
      out[:, 2c+1] = min(max(e[:, c] - start, 0), delta) * scale   (pde weight)
    which is exactly the row-major flattening of torch.stack([data, pde], dim=1).
    """
    def kernel(e_ref, o_ref):
        e = e_ref[...].astype(jnp.float32)                              # (R, 128)
        pde = jnp.minimum(jnp.maximum(e - start, 0.0), delta) * scale   # (R, 128)
        # 0/1 scatter matrix S[c, 2c+1] = 1: one exact MXU pass moves pde[:, c]
        # into output lane 2c+1 (keeps every store lane-dense and unmasked).
        src = lax.broadcasted_iota(jnp.int32, (_LANES, _PAIR), 0)
        dst = lax.broadcasted_iota(jnp.int32, (_LANES, _PAIR), 1)
        scatter = (dst == 2 * src + 1).astype(jnp.float32)              # (128, 256)
        pde_odd = jnp.dot(pde, scatter,
                          preferred_element_type=jnp.float32,
                          precision=lax.Precision.HIGHEST)              # (R, 256), exact
        lane = lax.broadcasted_iota(jnp.int32, (1, _PAIR), 1)
        o_ref[...] = jnp.where((lane & 1) == 0, 1.0, pde_odd)
    return kernel


def _make_pde_kernel(start: float, delta: float, scale: float):
    """Fallback kernel computing only the pde weights (lane-major tiles)."""
    def kernel(e_ref, o_ref):
        e = e_ref[...].astype(jnp.float32)
        o_ref[...] = jnp.minimum(jnp.maximum(e - start, 0.0), delta) * scale
    return kernel


class WeightSchedulerLinear:
    """Pallas/TPU port of the PyTorch WeightSchedulerLinear module."""

    def __init__(self, pde_loss_start: int, pde_loss_full: int) -> None:
        # NOTE: like the torch original, assumes pde_loss_full > pde_loss_start
        # (a zero-length ramp is degenerate in both implementations).
        self.pde_loss_start = pde_loss_start
        self.pde_loss_full = pde_loss_full
        self.pde_delta = pde_loss_full - pde_loss_start
        self._start = float(pde_loss_start)
        self._delta = float(self.pde_delta)
        self._scale = 0.001 / float(self.pde_delta)
        self._interleaved_kernel = _make_interleaved_kernel(self._start, self._delta, self._scale)
        self._pde_kernel = _make_pde_kernel(self._start, self._delta, self._scale)
        self._params = pltpu.CompilerParams(
            dimension_semantics=("parallel",),    # shard the 1-D grid across both TCs on v7x
            vmem_limit_bytes=32 * 1024 * 1024,    # tiles are small; bounded on v7x's 64 MiB VMEM
        )

    # ---- tiny-N / scalar path: plain XLA, no kernel-launch overhead ----
    @functools.partial(jax.jit, static_argnums=0)
    def _weights_small(self, epoch: jax.Array) -> jax.Array:
        e = epoch.astype(jnp.float32)
        pde = jnp.minimum(jnp.maximum(e - self._start, 0.0), self._delta) * self._scale
        return jnp.stack([jnp.ones_like(pde), pde], axis=1)

    # ---- single-pass Pallas path for N % 128 == 0 ----
    @functools.partial(jax.jit, static_argnums=0)
    def _weights_pallas_dense(self, epoch: jax.Array) -> jax.Array:
        n = epoch.shape[0]
        rows = n // _LANES
        block_rows = rows if rows <= _MAX_BLOCK_ROWS else _MAX_BLOCK_ROWS
        out2d = pl.pallas_call(
            self._interleaved_kernel,
            out_shape=jax.ShapeDtypeStruct((rows, _PAIR), jnp.float32),
            grid=(pl.cdiv(rows, block_rows),),
            in_specs=[pl.BlockSpec((block_rows, _LANES), lambda i: (i, 0))],
            out_specs=pl.BlockSpec((block_rows, _PAIR), lambda i: (i, 0)),
            compiler_params=self._params,
        )(epoch.reshape(rows, _LANES))
        # Row-major contiguous reshape -> no data movement under jit.
        return out2d.reshape(n, 2)

    # ---- Pallas fallback: large N not a multiple of 128 ----
    @functools.partial(jax.jit, static_argnums=0)
    def _weights_pallas_lanes(self, epoch: jax.Array) -> jax.Array:
        n = epoch.shape[0]
        block_lanes = n if n <= _MAX_BLOCK_LANES else _MAX_BLOCK_LANES
        pde2d = pl.pallas_call(
            self._pde_kernel,
            out_shape=jax.ShapeDtypeStruct((1, n), jnp.float32),
            grid=(pl.cdiv(n, block_lanes),),
            in_specs=[pl.BlockSpec((1, block_lanes), lambda i: (0, i))],
            out_specs=pl.BlockSpec((1, block_lanes), lambda i: (0, i)),
            compiler_params=self._params,
        )(epoch.reshape(1, n))
        pde = pde2d.reshape(n)
        return jnp.stack([jnp.ones((n,), jnp.float32), pde], axis=1)

    def __call__(self, epoch) -> jax.Array:
        if not isinstance(epoch, jax.Array):
            epoch = jnp.asarray(epoch, dtype=jnp.float32)
        if epoch.ndim == 0:
            epoch = epoch.reshape(1)          # torch: epoch * torch.ones(1)
        n = epoch.shape[0]
        if n >= _MIN_PALLAS_N and n % _LANES == 0:
            return self._weights_pallas_dense(epoch)
        if n >= _MIN_PALLAS_N:
            return self._weights_pallas_lanes(epoch)
        return self._weights_small(epoch)


if __name__ == "__main__":
    key = jax.random.PRNGKey(0)
    sched = WeightSchedulerLinear(pde_loss_start=10, pde_loss_full=20)

    def ref_weights(e):
        pde = jnp.clip((e.astype(jnp.float32) - 10.0) / 10.0, 0.0, 1.0) * 0.001
        return jnp.stack([jnp.ones_like(pde), pde], axis=1)

    k1, k2, k3 = jax.random.split(key, 3)

    # 1) Single-pass interleaved Pallas path (N % 128 == 0), multi-row tiles.
    epochs_big = jax.random.uniform(k1, (2048,), jnp.float32, minval=0.0, maxval=30.0)
    w_big = jax.block_until_ready(sched(epochs_big))
    assert w_big.shape == (2048, 2), w_big.shape
    assert jnp.allclose(w_big, ref_weights(epochs_big), atol=1e-5)

    # 2) Same path with a full-extent (9, 128) block (rows not a multiple of 8).
    epochs_mid = jax.random.uniform(k2, (1152,), jnp.float32, minval=0.0, maxval=30.0)
    w_mid = jax.block_until_ready(sched(epochs_mid))
    assert w_mid.shape == (1152, 2), w_mid.shape
    assert jnp.allclose(w_mid, ref_weights(epochs_mid), atol=1e-5)

    # 3) Lane-major Pallas fallback (N >= 1024, not a multiple of 128).
    epochs_rag = jax.random.uniform(k3, (1200,), jnp.float32, minval=0.0, maxval=30.0)
    w_rag = jax.block_until_ready(sched(epochs_rag))
    assert w_rag.shape == (1200, 2), w_rag.shape
    assert jnp.allclose(w_rag, ref_weights(epochs_rag), atol=1e-6)

    # 4) Integer epochs go through the dense Pallas path (cast happens in-kernel).
    epochs_int = (jnp.arange(1024, dtype=jnp.int32) * 7) % 31
    w_int = jax.block_until_ready(sched(epochs_int))
    assert w_int.shape == (1024, 2), w_int.shape
    assert jnp.allclose(w_int, ref_weights(epochs_int), atol=1e-5)

    # 5) Tiny-N and scalar paths bypass Pallas (launch overhead would dominate).
    epochs_small = jax.random.uniform(key, (8,), jnp.float32, minval=0.0, maxval=30.0)
    w_small = jax.block_until_ready(sched(epochs_small))
    assert w_small.shape == (8, 2), w_small.shape
    assert jnp.allclose(w_small, ref_weights(epochs_small), atol=1e-6)

    w_scalar = jax.block_until_ready(sched(15.0))
    assert w_scalar.shape == (1, 2), w_scalar.shape
    assert jnp.allclose(w_scalar, jnp.array([[1.0, 0.0005]]), atol=1e-6)

    print("KERNEL_OK")
</pallas_src>

<mosaic_0001>
module attributes {stable_mosaic.version = 11 : i64} {
  func.func @kernel(%arg0: i32, %arg1: memref<16x128xf32, #tpu.memory_space<vmem>>, %arg2: memref<16x256xf32, #tpu.memory_space<vmem>>) attributes {dimension_semantics = [#tpu.dimension_semantics<parallel>], iteration_bounds = array<i64: 1>, scalar_prefetch = 0 : i64, scratch_operands = 0 : i64, tpu.core_type = #tpu.core_type<tc>, window_params = [{transform_indices = @transform_0, window_bounds = array<i64: 16, 128>}, {transform_indices = @transform_1, window_bounds = array<i64: 16, 256>}]} {
    %c0 = arith.constant 0 : index
    %c0_0 = arith.constant 0 : index
    %0 = vector.load %arg1[%c0, %c0_0] : memref<16x128xf32, #tpu.memory_space<vmem>>, vector<16x128xf32>
    %cst = arith.constant 1.000000e+01 : f32
    %1 = vector.broadcast %cst : f32 to vector<16x128xf32>
    %2 = arith.subf %0, %1 : vector<16x128xf32>
    %cst_1 = arith.constant 0.000000e+00 : f32
    %3 = vector.broadcast %cst_1 : f32 to vector<16x128xf32>
    %4 = arith.maximumf %2, %3 : vector<16x128xf32>
    %cst_2 = arith.constant 1.000000e+01 : f32
    %5 = vector.broadcast %cst_2 : f32 to vector<16x128xf32>
    %6 = arith.minimumf %4, %5 : vector<16x128xf32>
    %cst_3 = arith.constant 9.99999974E-5 : f32
    %7 = vector.broadcast %cst_3 : f32 to vector<16x128xf32>
    %8 = arith.mulf %6, %7 : vector<16x128xf32>
    %9 = tpu.iota {dimensions = array<i32: 0>} : vector<128x256xi32>
    %10 = tpu.iota {dimensions = array<i32: 1>} : vector<128x256xi32>
    %c2_i32 = arith.constant 2 : i32
    %11 = vector.broadcast %c2_i32 : i32 to vector<128x256xi32>
    %12 = arith.muli %11, %9 : vector<128x256xi32>
    %c1_i32 = arith.constant 1 : i32
    %13 = vector.broadcast %c1_i32 : i32 to vector<128x256xi32>
    %14 = arith.addi %12, %13 : vector<128x256xi32>
    %15 = arith.cmpi eq, %10, %14 : vector<128x256xi32>
    %16 = arith.extui %15 : vector<128x256xi1> to vector<128x256xi32>
    %17 = arith.sitofp %16 : vector<128x256xi32> to vector<128x256xf32>
    %cst_4 = arith.constant dense<0.000000e+00> : vector<16x256xf32>
    %18 = tpu.matmul %8, %17, %cst_4 {dimension_numbers = #tpu.dot_dimension_numbers<[1], [0], [0], [1], [0, 0, 1, 1], [], []>, precision = #tpu.contract_precision<fp32>} : vector<16x128xf32>, vector<128x256xf32>, vector<16x256xf32> -> vector<16x256xf32>
    %19 = tpu.iota {dimensions = array<i32: 1>} : vector<1x256xi32>
    %c1_i32_5 = arith.constant 1 : i32
    %20 = vector.broadcast %c1_i32_5 : i32 to vector<1x256xi32>
    %21 = arith.andi %19, %20 : vector<1x256xi32>
    %c0_i32 = arith.constant 0 : i32
    %22 = vector.broadcast %c0_i32 : i32 to vector<1x256xi32>
    %23 = arith.cmpi eq, %21, %22 : vector<1x256xi32>
    %cst_6 = arith.constant 1.000000e+00 : f32
    %24 = vector.shape_cast %23 : vector<1x256xi1> to vector<1x256xi1>
    %25 = vector.broadcast %24 : vector<1x256xi1> to vector<16x256xi1>
    %26 = vector.broadcast %cst_6 : f32 to vector<16x256xf32>
    %27 = arith.select %25, %26, %18 : vector<16x256xi1>, vector<16x256xf32>
    %c0_7 = arith.constant 0 : index
    %c0_8 = arith.constant 0 : index
    %28 = vector.load %arg2[%c0_7, %c0_8] : memref<16x256xf32, #tpu.memory_space<vmem>>, vector<16x256xf32>
    tpu.vector_store %arg2[%c0_7, %c0_8], %27 {strides = array<i32>} : memref<16x256xf32, #tpu.memory_space<vmem>>, vector<16x256xf32>,
    return
  }
  func.func @transform_0(%arg0: i32) -> (i32, i32) {
    %c0_i32 = arith.constant 0 : i32
    %c0_i32_0 = arith.constant 0 : i32
    return %arg0, %c0_i32 : i32, i32
  }
  func.func @transform_1(%arg0: i32) -> (i32, i32) {
    %c0_i32 = arith.constant 0 : i32
    %c0_i32_0 = arith.constant 0 : i32
    return %arg0, %c0_i32 : i32, i32
  }
}

</mosaic_0001>

<bundles_post_ra>
// kernel: _weights_pallas_dense.1
= control target key start
LH: loop header
LB: loop body
LE: loop exit
PB: predicated region body
PF: predicated region fallthrough
CT: control target
= control target key end

     0   :  { %6 = vsyncpa [#allocation3], 0  ;;  %s1476_s6 = smov [#allocation2]   ;;  %s2300_s0 = inlined_call_operand.hbm [shape: f32[16,128], index: 0, kind: input, shape index: {}]   ;;  %s2301_s1 = inlined_call_operand.vmem [shape: f32[16,256], index: 1, kind: output, shape index: {}]  }
   0x1   :  { %s12_s7 = sshll.u32 %s1476_s6, 4  ;;  %s1452_s10 = scalar_lea.hbm %s2300_s0, 256  ;;  %s13_s7 = int_to_ptr.vmem [resolvable:$true] %s12_s7 }
   0x2   :  { %p1453_p0 = scmp.ne.s32.totalorder %s2300_s0, %s1452_s10  ;;  %p1456_p1 = scmp.lt.u32.totalorder %s1452_s10, %s2300_s0 }
   0x4   :  { %p1458_p2 = pnand %p1456_p1, %p1453_p0 }
   0x6   :  { %1461 = shalt.err (!%p1458_p2)
}
   0x7   :  { %s1462_s15 = scalar_lea.vmem %s13_s7, 256  ;;  %p1467_p4 = scmp.lt.s32.totalorder %s13_s7, %s13_s7 }
   0x8   :  { %p1463_p3 = scmp.ne.s32.totalorder %s13_s7, %s1462_s15  ;;  %p1468_p5 = scmp.lt.s32.totalorder %s1462_s15, %s1462_s15 }
   0xa   :  { %p1469_p6 = por %p1468_p5, %p1467_p4 }
   0xc   :  { %p1470_p7 = pnand %p1469_p6, %p1463_p3 }
   0xe   :  { %1473 = shalt.err (!%p1470_p7)
}
   0xf   :  { %s1477_s16 = smov 128   ;;  %s1478_s17 = smov 8   ;;  %v32_v0 = vlaneseq }
  0x10   :  { %18 = dma.hbm_to_vmem [thread:$0]  %s2300_s0, 256, %s13_s7, [#allocation3], %s1477_s16, %s1477_s16, %s1478_s17  }
  0x11   :  { %1474 = dma.done.wait [#allocation3], 256  }
  0x12   :  { %1475 = vsyncadd [#allocation3], 4294967040  ;;  %v2329_v1 = vmov 0.0   ;;  %v1505_v2 = vshrl.u32 %v32_v0, 7  ;;  %v1507_v3 = vand.u32 127, %v32_v0  ;;  %v2362_v35 = vmov 0 }
  0x13   :  { %276 = vmatprep.mubr.f32.mxu1 %v2329_v1  ;;  %779 = vmatprep.mubr.f32.mxu0 %v2329_v1  ;;  %v2326_v21 = vmov 1.0|1.0   ;;  %v2365_v38 = vmov 0  ;;  %v2368_v54 = vmov 0  ;;  %v2371_v60 = vmov 0 }
  0x14   :  { %2352 = vst [vmem:[#allocation5_spill] sm:$0xff] %v1507_v3  ;;  %v34_v4 = vadd.s32 8, %v1505_v2  ;;  %v1511_v5 = vadd.s32 128, %v1507_v3  ;;  %v52_v6 = vmul.u32 2, %v1505_v2  ;;  %v35_v7 = vadd.s32 16, %v1505_v2 }
  0x15   :  { %v36_v8 = vadd.s32 24, %v1505_v2  ;;  %v37_v13 = vadd.s32 32, %v1505_v2  ;;  %v38_v14 = vadd.s32 40, %v1505_v2  ;;  %v39_v24 = vadd.s32 48, %v1505_v2 }
  0x16   :  { %2353 = vst [vmem:[#allocation6_spill] sm:$0xff] %v1511_v5  ;;  %v53_v9 = vmul.u32 2, %v34_v4  ;;  %v68_v10 = vadd.s32 1, %v52_v6  ;;  %v54_v11 = vmul.u32 2, %v35_v7  ;;  %v40_v30 = vadd.s32 56, %v1505_v2 }
  0x17   :  { %v55_v12 = vmul.u32 2, %v36_v8  ;;  %v56_v19 = vmul.u32 2, %v37_v13  ;;  %v41_v32 = vadd.s32 64, %v1505_v2  ;;  %v42_v33 = vadd.s32 72, %v1505_v2 }
  0x18   :  { %v69_v15 = vadd.s32 1, %v53_v9  ;;  %vm85_vm0 = vcmp.eq.s32.totalorder %v1511_v5, %v68_v10  ;;  %v70_v16 = vadd.s32 1, %v54_v11  ;;  %vm84_vm1 = vcmp.eq.s32.totalorder %v1507_v3, %v68_v10 }
  0x19   :  { %v71_v17 = vadd.s32 1, %v55_v12  ;;  %v57_v20 = vmul.u32 2, %v38_v14  ;;  %v1107_v22 = vsel %vm84_vm1, 1.0, %v2329_v1  ;;  %v1578_v28 = vadd.s32 1, %v56_v19 }
  0x1a   :  { %vm87_vm2 = vcmp.eq.s32.totalorder %v1511_v5, %v69_v15  ;;  %vm86_vm3 = vcmp.eq.s32.totalorder %v1507_v3, %v69_v15  ;;  %vm89_vm5 = vcmp.eq.s32.totalorder %v1511_v5, %v70_v16  ;;  %vm88_vm9 = vcmp.eq.s32.totalorder %v1507_v3, %v70_v16 }
  0x1b   :  { %vm1526_vm4 = vmpackc.low %vm87_vm2, %vm85_vm0  ;;  %vm91_vm6 = vcmp.eq.s32.totalorder %v1511_v5, %v71_v17  ;;  %vm90_vm10 = vcmp.eq.s32.totalorder %v1507_v3, %v71_v17  ;;  %v1576_v27 = vsub.f32 %v1107_v22, %v1107_v22  ;;  %v1580_v29 = vadd.s32 1, %v57_v20 }
  0x1c   :  { %1236 = vmatprep.subr.msk.bf16.mxu1 %vm1526_vm4, %v2326_v21  ;;  %1332 = vmatprep.subr.msk.bf16.mxu0 %vm1526_vm4, %v2326_v21  ;;  %vm1541_vm7 = vmpackc.low %vm86_vm3, %vm84_vm1  ;;  %v58_v31 = vmul.u32 2, %v39_v24  ;;  %v1109_v34 = vsel %vm86_vm3, 1.0, %v2329_v1  ;;  %vm93_vm12 = vcmp.eq.s32.totalorder %v1511_v5, %v1578_v28  ;;  %vm92_vm14 = vcmp.eq.s32.totalorder %v1507_v3, %v1578_v28 }
  0x1d   :  { %1238 = vmatpush1.bf16.msk.msra.mxu1 %vm1541_vm7, %v2326_v21  ;;  %1334 = vmatpush1.bf16.msk.msra.mxu0 %vm1541_vm7, %v2326_v21  ;;  %vm1556_vm8 = vmpackc.low %vm91_vm6, %vm89_vm5  ;;  %vm95_vm13 = vcmp.eq.s32.totalorder %v1511_v5, %v1580_v29  ;;  %v2324_v36 = vand.u32 4294901760, %v1576_v27  ;;  %vm2304_vm1 = vcmp.eq.s32.totalorder %v1507_v3, %v1580_v29  ;;  %v1619_v37 = vsub.f32 %v1109_v34, %v1109_v34 }
  0x1e   :  { %1240 = vmatprep.subr.msk.bf16.mxu1 %vm1556_vm8, %v2326_v21  ;;  %1336 = vmatprep.subr.msk.bf16.mxu0 %vm1556_vm8, %v2326_v21  ;;  %vm1572_vm11 = vmpackc.low %vm90_vm10, %vm88_vm9  ;;  %v59_v39 = vmul.u32 2, %v40_v30  ;;  %v1631_v40 = vadd.s32 1, %v58_v31  ;;  %v1108_v41 = vsel %vm85_vm0, 1.0, %v2329_v1  ;;  %v1110_v42 = vsel %vm87_vm2, 1.0, %v2329_v1 }
  0x1f   :  { %vm1606_vm15 = vmpackc.low %vm95_vm13, %vm93_vm12  ;;  %v60_v43 = vmul.u32 2, %v41_v32  ;;  %v61_v44 = vmul.u32 2, %v42_v33  ;;  %v1112_v45 = vsel %vm89_vm5, 1.0, %v2329_v1  ;;  %v1111_v46 = vsel %vm88_vm9, 1.0, %v2329_v1 }
  0x20   :  { %v2363_v35 = vsel %vm1606_vm15, 4294967295, %v2362_v35  ;;  %vm1627_vm3 = vmpackc.low %vm2304_vm1, %vm92_vm14  ;;  %v1651_v47 = vadd.s32 1, %v59_v39  ;;  %vm2303_vm0 = vcmp.eq.s32.totalorder %v1511_v5, %v1631_v40  ;;  %v1658_v48 = vsub.f32 %v1576_v27, %v2324_v36 }
  0x21   :  { %1242 = vmatpush1.bf16.msk.msra.mxu1 %vm1572_vm11, %v2326_v21  ;;  %1338 = vmatpush1.bf16.msk.msra.mxu0 %vm1572_vm11, %v2326_v21  ;;  %2364 = vst [vmem:[#allocation7_spill] sm:$0xff] %v2363_v35  ;;  %v2366_v38 = vsel %vm1627_vm3, 4294967295, %v2365_v38  ;;  %v1114_v49 = vsel %vm91_vm6, 1.0, %v2329_v1  ;;  %vm2306_vm2 = vcmp.eq.s32.totalorder %v1507_v3, %v1631_v40  ;;  %v1665_v50 = vadd.s32 1, %v60_v43 }
  0x22   :  { %1244 = vmatprep.subr.msk.bf16.mxu1 %vm1606_vm15, %v2326_v21  ;;  %1340 = vmatprep.subr.msk.bf16.mxu0 %vm1606_vm15, %v2326_v21  ;;  %2367 = vst [vmem:[#allocation8_spill] sm:$0xff] %v2366_v38  ;;  %v2323_v51 = vand.u32 4294901760, %v1619_v37  ;;  %v1113_v52 = vsel %vm90_vm10, 1.0, %v2329_v1  ;;  %vm2302_vm5 = vcmp.eq.s32.totalorder %v1511_v5, %v1651_v47  ;;  %vm2305_vm9 = vcmp.eq.s32.totalorder %v1507_v3, %v1651_v47 }
  0x23   :  { %v1675_v53 = vsub.f32 %v1111_v46, %v1111_v46  ;;  %vm1683_vm6 = vmpackc.low %vm2302_vm5, %vm2303_vm0  ;;  %v1687_v55 = vadd.s32 1, %v61_v44  ;;  %vm2310_vm10 = vcmp.eq.s32.totalorder %v1511_v5, %v1665_v50  ;;  %v43_v56 = vadd.s32 80, %v1505_v2 }
  0x24   :  { %v2369_v54 = vsel %vm1683_vm6, 4294967295, %v2368_v54  ;;  %v1692_v57 = vsub.f32 %v1108_v41, %v1108_v41  ;;  %v1694_v58 = vsub.f32 %v1110_v42, %v1110_v42  ;;  %v1696_v59 = vsub.f32 %v1112_v45, %v1112_v45  ;;  %vm1710_vm5 = vmpackc.low %vm2305_vm9, %vm2306_vm2 }
  0x25   :  { %1246 = vmatpush1.bf16.msk.msra.mxu1 %vm1627_vm3, %v2326_v21  ;;  %1342 = vmatpush1.bf16.msk.msra.mxu0 %vm1627_vm3, %v2326_v21  ;;  %2370 = vst [vmem:[#allocation9_spill] sm:$0xff] %v2369_v54  ;;  %v2372_v60 = vsel %vm1710_vm5, 4294967295, %v2371_v60  ;;  %v1714_v61 = vsub.f32 %v1114_v49, %v1114_v49  ;;  %vm2307_vm0 = vcmp.eq.s32.totalorder %v1511_v5, %v1687_v55  ;;  %v44_v62 = vadd.s32 88, %v1505_v2 }
  0x26   :  { %1248 = vmatprep.subr.msk.bf16.mxu1 %vm1683_vm6, %v2326_v21  ;;  %1344 = vmatprep.subr.msk.bf16.mxu0 %vm1683_vm6, %v2326_v21  ;;  %2373 = vst [vmem:[#allocation10_spill] sm:$0xff] %v2372_v60  ;;  %vm2309_vm1 = vcmp.eq.s32.totalorder %v1507_v3, %v1665_v50  ;;  %v1731_v0 = vsub.f32 %v1619_v37, %v2323_v51  ;;  %vm1741_vm9 = vmpackc.low %vm2307_vm0, %vm2310_vm10  ;;  %v2374_v6 = vmov 0  ;;  %v1116_v8 = vsel %vm93_vm12, 1.0, %v2329_v1 }
  0x27   :  { %v1733_v4 = vsub.f32 %v1113_v52, %v1113_v52  ;;  %v2375_v6 = vsel %vm1741_vm9, 4294967295, %v2374_v6  ;;  %vm2308_vm2 = vcmp.eq.s32.totalorder %v1507_v3, %v1687_v55  ;;  %v1115_v9 = vsel %vm92_vm14, 1.0, %v2329_v1 }
  0x28   :  { %2376 = vst [vmem:[#allocation11_spill] sm:$0xff] %v2375_v6  ;;  %vm1768_vm12 = vmpackc.low %vm2308_vm2, %vm2309_vm1  ;;  %v2377_v10 = vmov 0  ;;  %v62_v11 = vmul.u32 2, %v43_v56  ;;  %v1118_v12 = vsel %vm95_vm13, 1.0, %v2329_v1  ;;  %v63_v13 = vmul.u32 2, %v44_v62 }
  0x29   :  { %1250 = vmatpush1.bf16.msk.msra.mxu1 %vm1710_vm5, %v2326_v21  ;;  %1346 = vmatpush1.bf16.msk.msra.mxu0 %vm1710_vm5, %v2326_v21  ;;  %v2378_v10 = vsel %vm1768_vm12, 4294967295, %v2377_v10  ;;  %v45_v14 = vadd.s32 96, %v1505_v2  ;;  %v46_v15 = vadd.s32 104, %v1505_v2  ;;  %vm2380_vm14 = vcmp.eq.s32.totalorder %v1507_v3, %v1580_v29 }
  0x2a   :  { %1252 = vmatprep.subr.msk.bf16.mxu1 %vm1741_vm9, %v2326_v21  ;;  %1348 = vmatprep.subr.msk.bf16.mxu0 %vm1741_vm9, %v2326_v21  ;;  %2379 = vst [vmem:[#allocation12_spill] sm:$0xff] %v2378_v10  ;;  %v1117_v16 = vsel %vm2380_vm14, 1.0, %v2329_v1  ;;  %v1788_v17 = vadd.s32 1, %v62_v11  ;;  %v47_v19 = vadd.s32 112, %v1505_v2  ;;  %v48_v20 = vadd.s32 120, %v1505_v2 }
  0x2b   :  { %v1792_v22 = vsub.f32 %v1115_v9, %v1115_v9  ;;  %v1794_v24 = vadd.s32 1, %v63_v13  ;;  %v64_v28 = vmul.u32 2, %v45_v14  ;;  %v65_v29 = vmul.u32 2, %v46_v15 }
  0x2c   :  { %vm2312_vm13 = vcmp.eq.s32.totalorder %v1511_v5, %v1788_v17  ;;  %vm2313_vm14 = vcmp.eq.s32.totalorder %v1507_v3, %v1788_v17  ;;  %v66_v30 = vmul.u32 2, %v47_v19  ;;  %v67_v31 = vmul.u32 2, %v48_v20 }
  0x2d   :  { %1254 = vmatpush1.bf16.msk.msra.mxu1 %vm1768_vm12, %v2326_v21  ;;  %1350 = vmatpush1.bf16.msk.msra.mxu0 %vm1768_vm12, %v2326_v21  ;;  %vm2311_vm0 = vcmp.eq.s32.totalorder %v1511_v5, %v1794_v24  ;;  %v1806_v2 = vsub.f32 %v1116_v8, %v1116_v8  ;;  %v1808_v34 = vsub.f32 %v1118_v12, %v1118_v12  ;;  %v2384_v42 = vmov 0 }
  0x2e   :  { %v1810_v39 = vsub.f32 %v1117_v16, %v1117_v16  ;;  %vm2383_vm1 = vcmp.eq.s32.totalorder %v1507_v3, %v1631_v40  ;;  %vm1822_vm10 = vmpackc.low %vm2311_vm0, %vm2312_vm13  ;;  %vm2387_vm2 = vcmp.eq.s32.totalorder %v1507_v3, %v1651_v47  ;;  %v2389_v45 = vmov 0 }
  0x2f   :  { %2381 = vst [vmem:[#allocation13_spill] sm:$0xff] %v1806_v2  ;;  %2382 = vst [vmem:[#allocation14_spill] sm:$0xff] %v1808_v34  ;;  %v1119_v41 = vsel %vm2383_vm1, 1.0, %v2329_v1  ;;  %v2385_v42 = vsel %vm1822_vm10, 4294967295, %v2384_v42  ;;  %v1121_v44 = vsel %vm2387_vm2, 1.0, %v2329_v1  ;;  %1256 = vmatprep.subr.msk.bf16.mxu1 %vm1822_vm10, %v2326_v21  ;;  %1352 = vmatprep.subr.msk.bf16.mxu0 %vm1822_vm10, %v2326_v21  ;;  %vm2388_vm1 = vcmp.eq.s32.totalorder %v1507_v3, %v1794_v24 }
  0x30   :  { %2386 = vst [vmem:[#allocation15_spill] sm:$0xff] %v2385_v42  ;;  %vm1843_vm0 = vmpackc.low %vm2388_vm1, %vm2313_vm14  ;;  %v1847_v46 = vadd.s32 1, %v64_v28  ;;  %v1849_v49 = vadd.s32 1, %v65_v29  ;;  %vm2392_vm2 = vcmp.eq.s32.totalorder %v1511_v5, %v1631_v40  ;;  %vm2393_vm13 = vcmp.eq.s32.totalorder %v1511_v5, %v1651_v47 }
  0x31   :  { %v2390_v45 = vsel %vm1843_vm0, 4294967295, %v2389_v45  ;;  %v1120_v52 = vsel %vm2392_vm2, 1.0, %v2329_v1  ;;  %v1122_v56 = vsel %vm2393_vm13, 1.0, %v2329_v1  ;;  %1258 = vmatpush1.bf16.msk.msra.mxu1 %vm1843_vm0, %v2326_v21  ;;  %1354 = vmatpush1.bf16.msk.msra.mxu0 %vm1843_vm0, %v2326_v21  ;;  %v1865_v62 = vadd.s32 1, %v66_v30 }
  0x32   :  { %2391 = vst [vmem:[#allocation16_spill] sm:$0xff] %v2390_v45  ;;  %v1867_v8 = vadd.s32 1, %v67_v31  ;;  %v1869_v9 = vsub.f32 %v1119_v41, %v1119_v41  ;;  %vm2316_vm1 = vcmp.eq.s32.totalorder %v1511_v5, %v1847_v46  ;;  %vm2315_vm13 = vcmp.eq.s32.totalorder %v1511_v5, %v1849_v49  ;;  %v22_v41 = vld [vmem:[#allocation2] sm:$0xff] }
  0x33   :  { %v1878_v47 = vsub.f32 %v1121_v44, %v1121_v44  ;;  %vm2394_vm14 = vcmp.eq.s32.totalorder %v1511_v5, %v1665_v50  ;;  %vm1890_vm0 = vmpackc.low %vm2315_vm13, %vm2316_vm1  ;;  %v2395_v12 = vmov 0  ;;  %vm2317_vm2 = vcmp.eq.s32.totalorder %v1507_v3, %v1849_v49 }
  0x34   :  { %v1124_v11 = vsel %vm2394_vm14, 1.0, %v2329_v1  ;;  %v2396_v12 = vsel %vm1890_vm0, 4294967295, %v2395_v12  ;;  %v1896_v13 = vsub.f32 %v1120_v52, %v1120_v52  ;;  %v1898_v14 = vsub.f32 %v1122_v56, %v1122_v56  ;;  %1260 = vmatprep.subr.msk.bf16.mxu1 %vm1890_vm0, %v2326_v21  ;;  %1356 = vmatprep.subr.msk.bf16.mxu0 %vm1890_vm0, %v2326_v21 }
  0x35   :  { %2397 = vst [vmem:[#allocation17_spill] sm:$0xff] %v2396_v12  ;;  %vm2400_vm14 = vcmp.eq.s32.totalorder %v1507_v3, %v1665_v50  ;;  %vm2401_vm13 = vcmp.eq.s32.totalorder %v1507_v3, %v1847_v46  ;;  %v2402_v16 = vmov 0  ;;  %v301_v50 = vand.u32 4294901760, %v1692_v57 }
  0x36   :  { %2398 = vst [vmem:[#allocation18_spill] sm:$0xff] %v1896_v13  ;;  %2399 = vst [vmem:[#allocation19_spill] sm:$0xff] %v1898_v14  ;;  %v1123_v15 = vsel %vm2400_vm14, 1.0, %v2329_v1  ;;  %vm2405_vm14 = vcmp.eq.s32.totalorder %v1507_v3, %v1687_v55  ;;  %v313_v20 = vand.u32 4294901760, %v1694_v58  ;;  %v1941_v30 = vsub.f32 %v1124_v11, %v1124_v11  ;;  %v2459_v23 = vld [vmem:[#allocation13_spill] sm:$0xff] }
  0x37   :  { %vm1916_vm1 = vmpackc.low %vm2317_vm2, %vm2401_vm13  ;;  %v1125_v19 = vsel %vm2405_vm14, 1.0, %v2329_v1  ;;  %vm2321_vm13 = vcmp.eq.s32.totalorder %v1511_v5, %v1865_v62  ;;  %vm2320_vm2 = vcmp.eq.s32.totalorder %v1511_v5, %v1867_v8  ;;  %vm2406_vm14 = vcmp.eq.s32.totalorder %v1511_v5, %v1687_v55 }
  0x38   :  { %v2403_v16 = vsel %vm1916_vm1, 4294967295, %v2402_v16  ;;  %1262 = vmatpush1.bf16.msk.msra.mxu1 %vm1916_vm1, %v2326_v21  ;;  %1358 = vmatpush1.bf16.msk.msra.mxu0 %vm1916_vm1, %v2326_v21  ;;  %v1126_v29 = vsel %vm2406_vm14, 1.0, %v2329_v1  ;;  %vm1949_vm1 = vmpackc.low %vm2320_vm2, %vm2321_vm13  ;;  %v2407_v31 = vmov 0  ;;  %vm2325_vm0 = vcmp.eq.s32.totalorder %v1507_v3, %v1865_v62 }
  0x39   :  { %2404 = vst [vmem:[#allocation20_spill] sm:$0xff] %v2403_v16  ;;  %v2408_v31 = vsel %vm1949_vm1, 4294967295, %v2407_v31  ;;  %v1956_v55 = vsub.f32 %v1123_v15, %v1123_v15  ;;  %vm2410_vm14 = vcmp.eq.s32.totalorder %v1507_v3, %v1788_v17  ;;  %1264 = vmatprep.subr.msk.bf16.mxu1 %vm1949_vm1, %v2326_v21  ;;  %1360 = vmatprep.subr.msk.bf16.mxu0 %vm1949_vm1, %v2326_v21  ;;  %v2412_v15 = vmov 0 }
  0x3a   :  { %2409 = vst [vmem:[#allocation21_spill] sm:$0xff] %v2408_v31  ;;  %v1127_v52 = vsel %vm2410_vm14, 1.0, %v2329_v1  ;;  %vm2322_vm2 = vcmp.eq.s32.totalorder %v1507_v3, %v1867_v8  ;;  %v1970_v56 = vsub.f32 %v1125_v19, %v1125_v19  ;;  %vm2411_vm13 = vcmp.eq.s32.totalorder %v1507_v3, %v1794_v24 }
  0x3b   :  { %v1129_v11 = vsel %vm2411_vm13, 1.0, %v2329_v1  ;;  %vm1982_vm14 = vmpackc.low %vm2322_vm2, %vm2325_vm0  ;;  %v302_v44 = vsub.f32 %v1692_v57, %v301_v50  ;;  %v314_v19 = vsub.f32 %v1694_v58, %v313_v20  ;;  %v1988_v28 = vsub.f32 %v1126_v29, %v1126_v29 }
  0x3c   :  { %v2413_v15 = vsel %vm1982_vm14, 4294967295, %v2412_v15  ;;  %vm2416_vm13 = vcmp.eq.s32.totalorder %v1511_v5, %v1788_v17  ;;  %1266 = vmatpush1.bf16.msk.msra.mxu1 %vm1982_vm14, %v2326_v21  ;;  %1362 = vmatpush1.bf16.msk.msra.mxu0 %vm1982_vm14, %v2326_v21  ;;  %v1363_v43 = vpack.c.bf16 %v313_v20, %v301_v50  ;;  %v1105_v32 = vadd.f32 -10.0, %v22_v41 }
  0x3d   :  { %2414 = vst [vmem:[#allocation22_spill] sm:$0xff] %v2413_v15  ;;  %2415 = vst [vmem:[#allocation23_spill] sm:$0xff] %v1988_v28  ;;  %v1128_v40 = vsel %vm2416_vm13, 1.0, %v2329_v1  ;;  %vm2417_vm2 = vcmp.eq.s32.totalorder %v1511_v5, %v1794_v24  ;;  %v2004_v63 = vsub.f32 %v1127_v52, %v1127_v52  ;;  %v303_v51 = vand.u32 4294901760, %v302_v44 }
  0x3e   :  { %v1130_v29 = vsel %vm2417_vm2, 1.0, %v2329_v1  ;;  %v315_v17 = vand.u32 4294901760, %v314_v19  ;;  %v2006_v36 = vsub.f32 %v1129_v11, %v1129_v11  ;;  %vm2418_vm13 = vcmp.eq.s32.totalorder %v1507_v3, %v1847_v46  ;;  %1364 = vmatprep.subr.bf16.mxu0 %v1363_v43 }
  0x3f   :  { %v1131_v33 = vsel %vm2418_vm13, 1.0, %v2329_v1  ;;  %vm2419_vm0 = vcmp.eq.s32.totalorder %v1507_v3, %v1849_v49  ;;  %v26_v20 = vmax.f32 %v1105_v32, 0.0  ;;  %v325_v52 = vand.u32 4294901760, %v1696_v59 }
  0x40   :  { %v1133_v50 = vsel %vm2419_vm0, 1.0, %v2329_v1  ;;  %v1267_v44 = vpack.c.bf16 %v315_v17, %v303_v51  ;;  %v2019_v11 = vsub.f32 %v1128_v40, %v1128_v40  ;;  %v2021_v19 = vsub.f32 %v1130_v29, %v1130_v29 }
  0x41   :  { %v28_v21 = vmin.f32 %v26_v20, 10.0  ;;  %v337_v7 = vand.u32 4294901760, %v1714_v61  ;;  %vm2421_vm0 = vcmp.eq.s32.totalorder %v1511_v5, %v1847_v46  ;;  %vm2422_vm2 = vcmp.eq.s32.totalorder %v1511_v5, %v1849_v49 }
  0x42   :  { %2420 = vst [vmem:[#allocation24_spill] sm:$0xff] %v2019_v11  ;;  %v1132_v43 = vsel %vm2421_vm0, 1.0, %v2329_v1  ;;  %v1134_v32 = vsel %vm2422_vm2, 1.0, %v2329_v1  ;;  %v2032_v51 = vsub.f32 %v1131_v33, %v1131_v33  ;;  %v2034_v17 = vsub.f32 %v1133_v50, %v1133_v50  ;;  %1268 = vmatprep.subr.bf16.mxu1 %v1267_v44 }
  0x43   :  { %vm2423_vm13 = vcmp.eq.s32.totalorder %v1511_v5, %v1865_v62  ;;  %v30_v20 = vmul.f32 0.0001, %v28_v21  ;;  %vm2424_vm0 = vcmp.eq.s32.totalorder %v1511_v5, %v1867_v8  ;;  %v326_v33 = vsub.f32 %v1696_v59, %v325_v52 }
  0x44   :  { %v1136_v46 = vsel %vm2423_vm13, 1.0, %v2329_v1  ;;  %v1138_v49 = vsel %vm2424_vm0, 1.0, %v2329_v1  ;;  %v349_v50 = vand.u32 4294901760, %v1806_v2  ;;  %v361_v44 = vand.u32 4294901760, %v1808_v34 }
  0x45   :  { %v2049_v40 = vsub.f32 %v1132_v43, %v1132_v43  ;;  %v2051_v29 = vsub.f32 %v1134_v32, %v1134_v32  ;;  %v2053_v41 = vand.u32 4294901760, %v30_v20  ;;  %v338_v24 = vsub.f32 %v1714_v61, %v337_v7 }
  0x46   :  { %v2426_v1 = vand.u32 4294901760, %v1675_v53  ;;  %v2427_v31 = vand.u32 4294901760, %v1733_v4  ;;  %v2064_v43 = vsub.f32 %v1136_v46, %v1136_v46  ;;  %v2066_v32 = vsub.f32 %v1138_v49, %v1138_v49 }
  0x47   :  { %2425 = vst [vmem:[#allocation25_spill] sm:$0xff] %v2051_v29  ;;  %v2069_v12 = vsub.f32 %v30_v20, %v2053_v41  ;;  %v2429_v45 = vand.u32 4294901760, %v1576_v27  ;;  %v2430_v21 = vand.u32 4294901760, %v1619_v37  ;;  %v327_v42 = vand.u32 4294901760, %v326_v33 }
  0x48   :  { %v332_v5 = vsub.f32 %v1675_v53, %v2426_v1  ;;  %v344_v16 = vsub.f32 %v1733_v4, %v2427_v31  ;;  %v1367_v10 = vpack.c.bf16 %v337_v7, %v325_v52  ;;  %v350_v1 = vsub.f32 %v1806_v2, %v349_v50 }
  0x49   :  { %2428 = vst [vmem:[#allocation26_spill] sm:$0xff] %v2069_v12  ;;  %v1365_v15 = vpack.c.bf16 %v2430_v21, %v2429_v45  ;;  %v362_v6 = vsub.f32 %v1808_v34, %v361_v44  ;;  %v279_v31 = vand.u32 4294901760, %v2069_v12  ;;  %v339_v46 = vand.u32 4294901760, %v338_v24 }
  0x4a   :  { %v373_v49 = vand.u32 4294901760, %v1896_v13  ;;  %v385_v60 = vand.u32 4294901760, %v1898_v14  ;;  %v2431_v20 = vand.u32 4294901760, %v1658_v48  ;;  %v2432_v54 = vand.u32 4294901760, %v1731_v0 }
  0x4b   :  { %v333_v35 = vand.u32 4294901760, %v332_v5  ;;  %v345_v45 = vand.u32 4294901760, %v344_v16  ;;  %v2433_v7 = vand.u32 4294901760, %v1675_v53  ;;  %v2434_v52 = vand.u32 4294901760, %v1733_v4  ;;  %783 = vmatmul.mubr.f32.vlgmr.msra.gmra.mrb[0].mxu0 %v279_v31 }
  0x4c   :  { %v1269_v38 = vpack.c.bf16 %v2432_v54, %v2431_v20  ;;  %v280_v21 = vsub.f32 %v2069_v12, %v279_v31  ;;  %v2435_v24 = vand.u32 4294901760, %v1792_v22  ;;  %v397_v2 = vand.u32 4294901760, %v1941_v30  ;;  %1366 = vmatpush1.bf16.msra.mxu0 %v1365_v15 }
  0x4d   :  { %v1369_v33 = vpack.c.bf16 %v2434_v52, %v2433_v7  ;;  %v409_v48 = vand.u32 4294901760, %v1988_v28  ;;  %v351_v54 = vand.u32 4294901760, %v350_v1  ;;  %v363_v5 = vand.u32 4294901760, %v362_v6  ;;  %1368 = vmatprep.subr.bf16.mxu0 %v1367_v10 }
  0x4e   :  { %v356_v34 = vsub.f32 %v1792_v22, %v2435_v24  ;;  %v1371_v0 = vpack.c.bf16 %v361_v44, %v349_v50  ;;  %v2436_v16 = vand.u32 4294901760, %v1810_v39  ;;  %v281_v7 = vand.u32 4294901760, %v280_v21 }
  0x4f   :  { %v1271_v52 = vpack.c.bf16 %v339_v46, %v327_v42  ;;  %v374_v31 = vsub.f32 %v1896_v13, %v373_v49  ;;  %v386_v12 = vsub.f32 %v1898_v14, %v385_v60  ;;  %v2437_v24 = vmov 0.0  }
  0x50   :  { %v368_v20 = vsub.f32 %v1810_v39, %v2436_v16  ;;  %788 = vmatprep.mubr.f32.mxu0 %v2437_v24  ;;  %vm2438_vm2 = vcmp.eq.s32.totalorder %v1507_v3, %v1865_v62  ;;  %vm2439_vm13 = vcmp.eq.s32.totalorder %v1507_v3, %v1867_v8  ;;  %v2440_v50 = vand.u32 4294901760, %v1869_v9  ;;  %282 = vmatmul.mubr.f32.vlgmr.msra.gmra.mrb[0].mxu1 %v281_v7 }
  0x51   :  { %v1135_v15 = vsel %vm2438_vm2, 1.0, %v2437_v24  ;;  %v1137_v6 = vsel %vm2439_vm13, 1.0, %v2437_v24  ;;  %v2441_v42 = vand.u32 4294901760, %v1878_v47  ;;  %v1273_v1 = vpack.c.bf16 %v345_v45, %v333_v35  ;;  %1270 = vmatpush1.bf16.msra.mxu1 %v1269_v38  ;;  %1370 = vmatpush1.bf16.msra.mxu0 %v1369_v33 }
  0x52   :  { %v380_v10 = vsub.f32 %v1869_v9, %v2440_v50  ;;  %v357_v46 = vand.u32 4294901760, %v356_v34  ;;  %v398_v21 = vsub.f32 %v1941_v30, %v397_v2  ;;  %v410_v62 = vsub.f32 %v1988_v28, %v409_v48  ;;  %1272 = vmatprep.subr.bf16.mxu1 %v1271_v52  ;;  %1372 = vmatprep.subr.bf16.mxu0 %v1371_v0 }
  0x53   :  { %v392_v44 = vsub.f32 %v1878_v47, %v2441_v42  ;;  %v1275_v16 = vpack.c.bf16 %v363_v5, %v351_v54  ;;  %v369_v8 = vand.u32 4294901760, %v368_v20  ;;  %v2442_v3 = vand.u32 4294901760, %v1792_v22  ;;  %287 = vmatprep.mubr.f32.mxu1 %v2437_v24 }
  0x54   :  { %v2443_v14 = vand.u32 4294901760, %v1810_v39  ;;  %v421_v13 = vand.u32 4294901760, %v2019_v11  ;;  %v375_v7 = vand.u32 4294901760, %v374_v31  ;;  %v387_v35 = vand.u32 4294901760, %v386_v12 }
  0x55   :  { %v1375_v34 = vpack.c.bf16 %v385_v60, %v373_v49  ;;  %v433_v45 = vand.u32 4294901760, %v2021_v19  ;;  %v381_v42 = vand.u32 4294901760, %v380_v10  ;;  %v393_v28 = vand.u32 4294901760, %v392_v44  ;;  %v23_v49 = vld [vmem:[#allocation2 + $0x8] sm:$0xff]  ;;  %1274 = vmatpush1.bf16.msra.mxu1 %v1273_v1 }
  0x56   :  { %v1373_v50 = vpack.c.bf16 %v2443_v14, %v2442_v3  ;;  %v2444_v38 = vand.u32 4294901760, %v1956_v55  ;;  %v2445_v54 = vand.u32 4294901760, %v1970_v56  ;;  %v2129_v3 = vsub.f32 %v1135_v15, %v1135_v15  ;;  %1276 = vmatprep.subr.bf16.mxu1 %v1275_v16 }
  0x57   :  { %v2131_v14 = vsub.f32 %v1137_v6, %v1137_v6  ;;  %v399_v12 = vand.u32 4294901760, %v398_v21  ;;  %v411_v60 = vand.u32 4294901760, %v410_v62  ;;  %v1277_v0 = vpack.c.bf16 %v369_v8, %v357_v46 }
  0x58   :  { %v404_v33 = vsub.f32 %v1956_v55, %v2444_v38  ;;  %v416_v5 = vsub.f32 %v1970_v56, %v2445_v54  ;;  %1374 = vmatpush1.bf16.msra.mxu0 %v1373_v50  ;;  %v2446_v20 = vand.u32 4294901760, %v1869_v9  ;;  %v2447_v52 = vand.u32 4294901760, %v1878_v47 }
  0x59   :  { %v422_v10 = vsub.f32 %v2019_v11, %v421_v13  ;;  %v445_v44 = vand.u32 4294901760, %v2049_v40  ;;  %v1279_v15 = vpack.c.bf16 %v387_v35, %v375_v7  ;;  %1376 = vmatprep.subr.bf16.mxu0 %v1375_v34  ;;  %v1379_v6 = vpack.c.bf16 %v409_v48, %v397_v2  ;;  %1278 = vmatpush1.bf16.msra.mxu1 %v1277_v0 }
  0x5a   :  { %v1377_v31 = vpack.c.bf16 %v2447_v52, %v2446_v20  ;;  %v434_v21 = vsub.f32 %v2021_v19, %v433_v45  ;;  %v457_v62 = vand.u32 4294901760, %v2051_v29  ;;  %v1281_v1 = vpack.c.bf16 %v393_v28, %v381_v42 }
  0x5b   :  { %v405_v46 = vand.u32 4294901760, %v404_v33  ;;  %v417_v8 = vand.u32 4294901760, %v416_v5  ;;  %v1106_v50 = vadd.f32 -10.0, %v23_v49  ;;  %v1283_v38 = vpack.c.bf16 %v411_v60, %v399_v12  ;;  %1280 = vmatprep.subr.bf16.mxu1 %v1279_v15 }
  0x5c   :  { %v2448_v54 = vand.u32 4294901760, %v1956_v55  ;;  %v2449_v20 = vand.u32 4294901760, %v1970_v56  ;;  %v2450_v11 = vand.u32 4294901760, %v2004_v63  ;;  %v2451_v2 = vand.u32 4294901760, %v2006_v36  ;;  %1378 = vmatpush1.bf16.msra.mxu0 %v1377_v31 }
  0x5d   :  { %v423_v28 = vand.u32 4294901760, %v422_v10  ;;  %v1383_v7 = vpack.c.bf16 %v433_v45, %v421_v13  ;;  %v446_v35 = vsub.f32 %v2049_v40, %v445_v44  ;;  %v27_v34 = vmax.f32 %v1106_v50, 0.0  ;;  %1380 = vmatprep.subr.bf16.mxu0 %v1379_v6  ;;  %1282 = vmatpush1.bf16.msra.mxu1 %v1281_v1 }
  0x5e   :  { %v1381_v52 = vpack.c.bf16 %v2449_v20, %v2448_v54  ;;  %v428_v16 = vsub.f32 %v2004_v63, %v2450_v11  ;;  %v440_v48 = vsub.f32 %v2006_v36, %v2451_v2  ;;  %v435_v42 = vand.u32 4294901760, %v434_v21  ;;  %1284 = vmatprep.subr.bf16.mxu1 %v1283_v38 }
  0x5f   :  { %v458_v33 = vsub.f32 %v2051_v29, %v457_v62  ;;  %v469_v5 = vand.u32 4294901760, %v2064_v43  ;;  %v481_v11 = vand.u32 4294901760, %v2066_v32  ;;  %v475_v12 = vand.u32 4294901760, %v2129_v3 }
  0x60   :  { %v487_v60 = vand.u32 4294901760, %v2131_v14  ;;  %v1285_v49 = vpack.c.bf16 %v417_v8, %v405_v46  ;;  %v29_v0 = vmin.f32 %v27_v34, 10.0  ;;  %v429_v31 = vand.u32 4294901760, %v428_v16  ;;  %1382 = vmatpush1.bf16.msra.mxu0 %v1381_v52 }
  0x61   :  { %v441_v13 = vand.u32 4294901760, %v440_v48  ;;  %v2452_v45 = vand.u32 4294901760, %v2032_v51  ;;  %v2453_v15 = vand.u32 4294901760, %v2034_v17  ;;  %v2454_v21 = vand.u32 4294901760, %v2004_v63  ;;  %1384 = vmatprep.subr.bf16.mxu0 %v1383_v7 }
  0x62   :  { %v2455_v50 = vmov %v2451_v2  ;;  %v447_v20 = vand.u32 4294901760, %v446_v35  ;;  %v1387_v46 = vpack.c.bf16 %v457_v62, %v445_v44  ;;  %v31_v8 = vmul.f32 0.0001, %v29_v0  ;;  %1286 = vmatpush1.bf16.msra.mxu1 %v1285_v49 }
  0x63   :  { %v452_v10 = vsub.f32 %v2032_v51, %v2452_v45  ;;  %v464_v6 = vsub.f32 %v2034_v17, %v2453_v15  ;;  %v1385_v54 = vpack.c.bf16 %v2455_v50, %v2454_v21  ;;  %v1287_v16 = vpack.c.bf16 %v435_v42, %v423_v28 }
  0x64   :  { %v459_v2 = vand.u32 4294901760, %v458_v33  ;;  %v470_v48 = vsub.f32 %v2064_v43, %v469_v5  ;;  %v482_v34 = vsub.f32 %v2066_v32, %v481_v11  ;;  %v2169_v45 = vand.u32 4294901760, %v31_v8 }
  0x65   :  { %v1289_v1 = vpack.c.bf16 %v441_v13, %v429_v31  ;;  %v453_v52 = vand.u32 4294901760, %v452_v10  ;;  %v465_v15 = vand.u32 4294901760, %v464_v6  ;;  %v2456_v29 = vand.u32 4294901760, %v2032_v51  ;;  %1386 = vmatpush1.bf16.msra.mxu0 %v1385_v54  ;;  %1288 = vmatprep.subr.bf16.mxu1 %v1287_v16 }
  0x66   :  { %v2457_v21 = vand.u32 4294901760, %v2034_v17  ;;  %v2176_v44 = vsub.f32 %v31_v8, %v2169_v45  ;;  %v476_v62 = vsub.f32 %v2129_v3, %v475_v12  ;;  %v488_v38 = vsub.f32 %v2131_v14, %v487_v60  ;;  %1388 = vmatprep.subr.bf16.mxu0 %v1387_v46 }
  0x67   :  { %v1291_v28 = vpack.c.bf16 %v459_v2, %v447_v20  ;;  %v471_v7 = vand.u32 4294901760, %v470_v48  ;;  %v483_v42 = vand.u32 4294901760, %v482_v34  ;;  %v1391_v33 = vpack.c.bf16 %v481_v11, %v469_v5  ;;  %1290 = vmatpush1.bf16.msra.mxu1 %v1289_v1  ;;  %v2472_v48 = vld [vmem:[#allocation16_spill] sm:$0xff]  ;;  %v2475_v34 = vld [vmem:[#allocation17_spill] sm:$0xff] }
  0x68   :  { %v1389_v35 = vpack.c.bf16 %v2457_v21, %v2456_v29  ;;  %v290_v0 = vand.u32 4294901760, %v2176_v44  ;;  %v1293_v31 = vpack.c.bf16 %v465_v15, %v453_v52  ;;  %v477_v49 = vand.u32 4294901760, %v476_v62  ;;  %v2477_v1 = vld [vmem:[#allocation20_spill] sm:$0xff] }
  0x69   :  { %v489_v13 = vand.u32 4294901760, %v488_v38  ;;  %v1393_v10 = vpack.c.bf16 %v487_v60, %v475_v12  ;;  %1292 = vmatprep.subr.bf16.mxu1 %v1291_v28  ;;  %v1295_v6 = vpack.c.bf16 %v483_v42, %v471_v7  ;;  %v1299_v5 = vpack.c.bf16 %v1694_v58, %v1692_v57  ;;  %v2463_v58 = vld [vmem:[#allocation18_spill] sm:$0xff] }
  0x6a   :  { %1390 = vmatpush1.bf16.msra.mxu0 %v1389_v35  ;;  %v291_v29 = vsub.f32 %v2176_v44, %v290_v0  ;;  %v2458_v11 = vmov 1.0|1.0   ;;  %v1301_v12 = vpack.c.bf16 %v1619_v37, %v1576_v27  ;;  %v1303_v57 = vpack.c.bf16 %v1714_v61, %v1696_v59  ;;  %v2460_v27 = vld [vmem:[#allocation14_spill] sm:$0xff]  ;;  %v2464_v59 = vld [vmem:[#allocation19_spill] sm:$0xff] }
  0x6b   :  { %1392 = vmatprep.subr.bf16.mxu0 %v1391_v33  ;;  %792 = vmatmul.mubr.f32.gmra.mrb[2].mxu0 %v290_v0  ;;  %v1297_v54 = vpack.c.bf16 %v489_v13, %v477_v49  ;;  %v1305_v18 = vpack.c.bf16 %v1733_v4, %v1675_v53  ;;  %v1307_v37 = vpack.c.bf16 %v2460_v27, %v2459_v23 }
  0x6c   :  { %v292_v50 = vand.u32 4294901760, %v291_v29  ;;  %958 = vmatprep.mubr.f32.mxu0 %v2437_v24  ;;  %1294 = vmatpush1.bf16.msra.mxu1 %v1293_v31  ;;  %v1309_v53 = vpack.c.bf16 %v1810_v39, %v1792_v22  ;;  %v1311_v61 = vpack.c.bf16 %v2464_v59, %v2463_v58  ;;  %v1313_v60 = vpack.c.bf16 %v1878_v47, %v1869_v9  ;;  %v2467_v39 = vld [vmem:[#allocation23_spill] sm:$0xff]  ;;  %v2470_v9 = vld [vmem:[#allocation24_spill] sm:$0xff] }
  0x6d   :  { %1296 = vmatprep.subr.bf16.mxu1 %v1295_v6  ;;  %v1315_v20 = vpack.c.bf16 %v2467_v39, %v1941_v30  ;;  %v1317_v8 = vpack.c.bf16 %v1970_v56, %v1956_v55  ;;  %v1319_v47 = vpack.c.bf16 %v2021_v19, %v2470_v9  ;;  %v1321_v30 = vpack.c.bf16 %v2006_v36, %v2004_v63  ;;  %v2474_v55 = vld [vmem:[#allocation25_spill] sm:$0xff] }
  0x6e   :  { %1394 = vmatpush1.bf16.msra.mxu0 %v1393_v10  ;;  %293 = vmatmul.mubr.f32.gmra.mrb[2].mxu1 %v292_v50  ;;  %v1323_v56 = vpack.c.bf16 %v2474_v55, %v2049_v40  ;;  %v1325_v19 = vpack.c.bf16 %v2034_v17, %v2032_v51  ;;  %v1327_v36 = vpack.c.bf16 %v2066_v32, %v2064_v43  ;;  %v2481_v51 = vld [vmem:[#allocation26_spill] sm:$0xff]  ;;  %v2482_v43 = vld [vmem:[#allocation5_spill] sm:$0xff] }
  0x6f   :  { %523 = vmatprep.mubr.f32.mxu1 %v2437_v24  ;;  %1396 = vmatprep.subr.msk.bf16.mxu0 %vm1526_vm4, %v2458_v11  ;;  %vm2473_vm4 = vnez %v2472_v48  ;;  %v1329_v40 = vpack.c.bf16 %v2131_v14, %v2129_v3  ;;  %v1084_v32 = vand.u32 1, %v2482_v43  ;;  %v2483_v14 = vld [vmem:[#allocation6_spill] sm:$0xff] }
  0x70   :  { %1298 = vmatpush1.bf16.msra.mxu1 %v1297_v54  ;;  %v1085_v15 = vand.u32 1, %v2483_v14 }
  0x71   :  { %960 = vmatmul.mubr.f32.vlgmr.msra.gmra.mrb[0].mxu0 %v2053_v41  ;;  %1300 = vmatprep.subr.bf16.mxu1 %v1299_v5 }
  0x72   :  { %1398 = vmatpush1.bf16.msk.msra.mxu0 %vm1541_vm7, %v2458_v11  ;;  %965 = vmatprep.mubr.f32.mxu0 %v2437_v24  ;;  %vm2476_vm7 = vnez %v2475_v34 }
  0x73   :  { %1400 = vmatprep.subr.msk.bf16.mxu0 %vm1556_vm8, %v2458_v11  ;;  %525 = vmatmul.mubr.f32.vlgmr.msra.gmra.mrb[0].mxu1 %v2053_v41  ;;  %vm2478_vm8 = vnez %v2477_v1 }
  0x74   :  { %1302 = vmatpush1.bf16.msra.mxu1 %v1301_v12  ;;  %530 = vmatprep.mubr.f32.mxu1 %v2437_v24 }
  0x75   :  { %967 = vmatmul.mubr.f32.gmra.mrb[2].mxu0 %v2169_v45  ;;  %1304 = vmatprep.subr.bf16.mxu1 %v1303_v57 }
  0x76   :  { %1402 = vmatpush1.bf16.msk.msra.mxu0 %vm1572_vm11, %v2458_v11  ;;  %1069 = vmatprep.mubr.f32.mxu0 %v2437_v24  ;;  %vm2280_vm11 = vcmp.eq.s32.totalorder %v1084_v32, 0 }
  0x77   :  { %1404 = vmatprep.subr.msk.bf16.mxu0 %vm1606_vm15, %v2458_v11  ;;  %532 = vmatmul.mubr.f32.gmra.mrb[2].mxu1 %v2169_v45  ;;  %vm1087_vm15 = vcmp.eq.s32.totalorder %v1085_v15, 0 }
  0x78   :  { %1306 = vmatpush1.bf16.msra.mxu1 %v1305_v18  ;;  %666 = vmatprep.mubr.f32.mxu1 %v2437_v24 }
  0x79   :  { %1308 = vmatprep.subr.bf16.mxu1 %v1307_v37 }
  0x7a   :  { %1406 = vmatpush1.bf16.msk.msra.mxu0 %vm1627_vm3, %v2458_v11 }
  0x7b   :  { %1408 = vmatprep.subr.msk.bf16.mxu0 %vm1683_vm6, %v2458_v11 }
  0x7c   :  { %1310 = vmatpush1.bf16.msra.mxu1 %v1309_v53 }
  0x7d   :  { %1312 = vmatprep.subr.bf16.mxu1 %v1311_v61 }
  0x7e   :  { %1410 = vmatpush1.bf16.msk.msra.mxu0 %vm1710_vm5, %v2458_v11 }
  0x7f   :  { %1412 = vmatprep.subr.msk.bf16.mxu0 %vm1741_vm9, %v2458_v11 }
  0x80   :  { %1314 = vmatpush1.bf16.msra.mxu1 %v1313_v60 }
  0x81   :  { %1316 = vmatprep.subr.bf16.mxu1 %v1315_v20 }
  0x82   :  { %1414 = vmatpush1.bf16.msk.msra.mxu0 %vm1768_vm12, %v2458_v11 }
  0x83   :  { %1416 = vmatprep.subr.msk.bf16.mxu0 %vm1822_vm10, %v2458_v11 }
  0x84   :  { %1318 = vmatpush1.bf16.msra.mxu1 %v1317_v8 }
  0x85   :  { %1320 = vmatprep.subr.bf16.mxu1 %v1319_v47 }
  0x86   :  { %1418 = vmatpush1.bf16.msk.msra.mxu0 %vm2473_vm4, %v2458_v11 }
  0x87   :  { %1420 = vmatprep.subr.msk.bf16.mxu0 %vm2476_vm7, %v2458_v11 }
  0x88   :  { %1322 = vmatpush1.bf16.msra.mxu1 %v1321_v30 }
  0x89   :  { %1324 = vmatprep.subr.bf16.mxu1 %v1323_v56 }
  0x8a   :  { %1422 = vmatpush1.bf16.msk.msra.mxu0 %vm2478_vm8, %v2458_v11 }
  0x8b   :  { %1424 = vmatprep.subr.msk.bf16.mxu0 %vm1949_vm1, %v2458_v11 }
  0x8c   :  { %1326 = vmatpush1.bf16.msra.mxu1 %v1325_v19 }
  0x8d   :  { %1328 = vmatprep.subr.bf16.mxu1 %v1327_v36 }
  0x8e   :  { %1426 = vmatpush1.bf16.msk.msra.mxu0 %vm1982_vm14, %v2458_v11 }
  0x90   :  { %1330 = vmatpush1.bf16.msra.mxu1 %v1329_v40 }
  0x91   :  { %1071 = vmatmul.mubr.f32.vlgmr.msra.gmra.mrb[0].mxu0 %v2053_v41 }
  0x92   :  { %1076 = vmatprep.mubr.f32.mxu0 %v2437_v24 }
  0x93   :  { %669 = vmatmul.mubr.f32.vlgmr.msra.gmra.mrb[0].mxu1 %v2481_v51 }
  0x94   :  { %674 = vmatprep.mubr.f32.mxu1 %v2437_v24 }
  0x95   :  { %1078 = vmatmul.mubr.f32.gmra.mrb[2].mxu0 %v2169_v45 }
  0x97   :  { %677 = vmatmul.mubr.f32.gmra.mrb[2].mxu1 %v2176_v44 }
 0x164   :  { %v1072_v17 = vpop.f32.mrb[0].mxu0 }
 0x165   :  { %v1074_v3 = vpop.f32.mrb[1].mxu0 }
 0x166   :  { %v670_v21 = vpop.f32.mrb[0].mxu1 }
 0x167   :  { %v1427_v62 = vadd.f32 %v1072_v17, %v670_v21  ;;  %v672_v38 = vpop.f32.mrb[1].mxu1 }
 0x168   :  { %v1079_v35 = vpop.f32.mrb[2].mxu0  ;;  %v1428_v28 = vadd.f32 %v1074_v3, %v672_v38 }
 0x169   :  { %v1081_v45 = vpop.f32.mrb[3].mxu0  ;;  %v1092_v24 = vsel %vm2280_vm11, 1.0, %v1427_v62 }
 0x16a   :  { %1096 = vst [vmem:[%s2301_s1] sm:$0xff] %v1092_v24  ;;  %v1093_v44 = vsel %vm1087_vm15, 1.0, %v1428_v28  ;;  %v678_v7 = vpop.f32.mrb[2].mxu1 }
 0x16b   :  { %1097 = vst [vmem:[%s2301_s1 + $0x8] sm:$0xff] %v1093_v44  ;;  %v1429_v42 = vadd.f32 %v1079_v35, %v678_v7  ;;  %v680_v33 = vpop.f32.mrb[3].mxu1 }
 0x16c   :  { %v1430_v0 = vadd.f32 %v1081_v45, %v680_v33 }
 0x16d   :  { %v1094_v31 = vsel %vm2280_vm11, 1.0, %v1429_v42 }
 0x16e   :  { %1098 = vst [vmem:[%s2301_s1 + $0x10] sm:$0xff] %v1094_v31  ;;  %v1095_v29 = vsel %vm1087_vm15, 1.0, %v1430_v0 }
 0x16f   :  { %1099 = vst [vmem:[%s2301_s1 + $0x18] sm:$0xff] %v1095_v29 }
 0x170   :  { %1104 = vsyncpa [#allocation3], 1 }

</bundles_post_ra>
